<compile_context>
chip_gen: v7x
topology: tpu7x:2x2x1
jax: 0.10.0
libtpu: 0.0.40
codegen_flags: <defaults>
</compile_context>

<pallas_src>
import functools

import jax
import jax.numpy as jnp
from jax.experimental import pallas as pl
from jax.experimental.pallas import tpu as pltpu


# ----------------------------------------------------------------------------
# VMEM budgeting (generation aware: v5e/v6e 128 MiB, v7x 64 MiB per TensorCore)
# ----------------------------------------------------------------------------
def _vmem_budgets():
    try:
        cap = int(pltpu.get_tpu_info().vmem_capacity_bytes)
    except Exception:
        cap = 64 * 1024 * 1024                       # v7x-safe assumption
    tile_budget = min(int(cap * 0.60), 96 * 1024 * 1024)
    vmem_limit = min(int(cap * 0.75), 100 * 1024 * 1024)
    return tile_budget, vmem_limit


_TILE_BUDGET_BYTES, _VMEM_LIMIT_BYTES = _vmem_budgets()
_MAX_TILE_N = 4096


def _probe_buffered():
    if not hasattr(pl, "Buffered"):
        return False
    try:
        pl.BlockSpec((8, 128), lambda j: (0, 0), pipeline_mode=pl.Buffered(3))
        return True
    except TypeError:
        return False


_HAS_BUFFERED = _probe_buffered()


def _make_spec(shape, index_map, buffers=None):
    """BlockSpec with optional deeper pipelining on streamed operands."""
    if buffers is not None and _HAS_BUFFERED:
        try:
            return pl.BlockSpec(shape, index_map, pipeline_mode=pl.Buffered(buffers))
        except TypeError:
            pass
    return pl.BlockSpec(shape, index_map)


def _round_up(x, m):
    return -(-x // m) * m


def _choose_tile_n(n, per_col_floats, budget_bytes):
    """Pick a 128-aligned column tile given f32 elements streamed per column."""
    if n <= 256:
        return n                                     # single full-extent tile
    per_col_bytes = max(4 * per_col_floats, 4)
    tn = (budget_bytes // per_col_bytes) // 128 * 128
    tn = max(128, min(tn, _MAX_TILE_N))
    if tn >= n:
        # Split into two balanced tiles so both TensorCores (v7x megacore) get work.
        half = _round_up(_round_up(n, 2) // 2, 128)
        return half if half < n else n
    num_tiles = -(-n // tn)
    if num_tiles % 2 == 1:                           # even tile count for 2-TC balance
        num_tiles += 1
        tn = max(128, _round_up(-(-n // num_tiles), 128))
    return tn


# ----------------------------------------------------------------------------
# Fused  (W @ S_L  vs  X)  mean-squared-error kernel (optionally masked by L)
# ----------------------------------------------------------------------------
def _mse_kernel(*refs, has_w, has_mask, ragged, n, tn):
    i = 0
    w_ref = None
    if has_w:
        w_ref = refs[i]
        i += 1
    s_ref = refs[i]
    x_ref = refs[i + 1]
    i += 2
    m_ref = refs[i] if has_mask else None
    o_ref = refs[-1]

    t = s_ref[...].astype(jnp.float32)                           # (ks, tn)
    if has_w:
        t = jnp.dot(w_ref[...].astype(jnp.float32), t,
                    preferred_element_type=jnp.float32)          # one MXU matmul
    d = t - x_ref[...].astype(jnp.float32)                       # (m0, tn)
    if has_mask:
        d = d * m_ref[...].astype(jnp.float32)                   # fused L mask
    if ragged:
        col = (jax.lax.broadcasted_iota(jnp.int32, d.shape, 1)
               + pl.program_id(0) * tn)
        d = jnp.where(col < n, d, 0.0)                           # ragged last tile
    # Sublane (row) reduce only; cross-lane/tile reduce left to a tiny XLA sum.
    o_ref[0] = jnp.sum(d * d, axis=0, keepdims=True)             # (1, tn)


def fused_chain_mse(A_lst, S_last, X, mask=None):
    """mean( (A_0 @ ... @ A_{L-1} @ S_last - X)^2 ), optionally masked elementwise.

    With A_lst == [] this is exactly Fro_Norm(S_last, X) (entrywise MSE); with
    mask=L it is Fro_Norm(L*S_last, L*X).
    """
    A_lst = [jnp.asarray(a, jnp.float32) for a in A_lst]
    S = jnp.asarray(S_last, jnp.float32)
    Xf = jnp.asarray(X, jnp.float32)
    m0, n = Xf.shape
    ks, ns = S.shape
    assert ns == n, "S_L and X must have the same number of columns"
    numel = m0 * n

    has_w = len(A_lst) > 0
    W = None
    if has_w:
        # Collapse the A chain once (tiny XLA matmul) -> one matmul per column tile.
        W = functools.reduce(
            lambda a, b: jnp.dot(a, b, preferred_element_type=jnp.float32), A_lst)
        assert W.shape == (m0, ks)
    maskf = None if mask is None else jnp.asarray(mask, jnp.float32)

    def run(use_buffered):
        n_buf = 3 if use_buffered else 2
        per_col_floats = n_buf * ks + (n_buf + 1) * m0 + 2       # S, X, W@S temp, out
        if maskf is not None:
            per_col_floats += n_buf * m0
        budget = _TILE_BUDGET_BYTES - (2 * 4 * m0 * ks if has_w else 0)
        tn = _choose_tile_n(n, per_col_floats,
                            max(budget, 4 * per_col_floats * 128))
        num_tiles = -(-n // tn)
        ragged = (n % tn) != 0
        buffers = 3 if use_buffered else None

        in_specs, inputs = [], []
        if has_w:
            in_specs.append(pl.BlockSpec(W.shape, lambda j: (0, 0)))  # VMEM-resident W
            inputs.append(W)
        in_specs.append(_make_spec((ks, tn), lambda j: (0, j), buffers))
        inputs.append(S)
        in_specs.append(_make_spec((m0, tn), lambda j: (0, j), buffers))
        inputs.append(Xf)
        if maskf is not None:
            in_specs.append(_make_spec((m0, tn), lambda j: (0, j), buffers))
            inputs.append(maskf)

        kernel = functools.partial(_mse_kernel, has_w=has_w,
                                   has_mask=maskf is not None,
                                   ragged=ragged, n=n, tn=tn)
        flops = (2 * m0 * ks * n if has_w else 0) + 3 * m0 * n
        bytes_accessed = 4 * (S.size + Xf.size
                              + (W.size if has_w else 0)
                              + (maskf.size if maskf is not None else 0)
                              + num_tiles * tn)
        return pl.pallas_call(
            kernel,
            out_shape=jax.ShapeDtypeStruct((num_tiles, 1, tn), jnp.float32),
            grid=(num_tiles,),
            in_specs=in_specs,
            out_specs=pl.BlockSpec((1, 1, tn), lambda j: (j, 0, 0)),
            compiler_params=pltpu.CompilerParams(
                dimension_semantics=("parallel",),               # megacore / v7x 2 TCs
                vmem_limit_bytes=_VMEM_LIMIT_BYTES),
            cost_estimate=pl.CostEstimate(flops=flops, transcendentals=0,
                                          bytes_accessed=bytes_accessed),
        )(*inputs)

    try:
        partials = run(_HAS_BUFFERED)
    except Exception:
        if not _HAS_BUFFERED:
            raise
        partials = run(False)                                    # plain double-buffering
    # Tiny cross-tile / cross-lane reduction left to XLA (negligible vs one X read).
    # TODO(synk): PyTorch reference accumulates in float64; final sum here stays f32.
    return jnp.sum(partials) * (1.0 / float(numel))


# ----------------------------------------------------------------------------
# Fro_Norm  (entrywise mean of (x1 - x2)^2)
# ----------------------------------------------------------------------------
def _fat_2d(x):
    """Reshape to a lane-dense 2D slab (cols a multiple of 128 when possible)."""
    x = x.reshape(-1)
    numel = x.shape[0]
    for cols in (8192, 4096, 2048, 1024, 512, 256, 128):
        if numel % cols == 0:
            return x.reshape(numel // cols, cols)
    return x.reshape(1, numel)


def pallas_fro_norm(x1, x2):
    x1 = jnp.asarray(x1, jnp.float32)
    x2 = jnp.asarray(x2, jnp.float32)
    assert x1.size == x2.size, "Fro_Norm inputs must have the same number of elements"
    if x1.ndim == 2 and x1.shape == x2.shape:
        return fused_chain_mse([], x1, x2)
    # PyTorch Fro_Norm flattens; present a fat lane-dense slab instead of (1, N).
    return fused_chain_mse([], _fat_2d(x1), _fat_2d(x2))


# ----------------------------------------------------------------------------
# CrossEntropyLoss(reduction='mean') on lane-dense (c, n) logits, labels (n,)
# ----------------------------------------------------------------------------
def _ce_kernel(*refs, has_mask, ragged, n, tn, inv_n):
    if has_mask:
        logits_ref, label_ref, mask_ref, o_ref = refs
    else:
        logits_ref, label_ref, o_ref = refs
        mask_ref = None

    logits = logits_ref[...].astype(jnp.float32)                 # (c, tn): n on lanes
    labels = label_ref[...]                                      # (1, tn) int32
    if has_mask:
        mrow = mask_ref[...].astype(jnp.float32)                 # (1, tn)
        logits = logits * mrow                                   # L * pred
        labels = mrow.astype(jnp.int32) * labels                 # l * label
    m = jnp.max(logits, axis=0, keepdims=True)                   # sublane reduce
    lse = m + jnp.log(jnp.sum(jnp.exp(logits - m), axis=0, keepdims=True))
    classes = jax.lax.broadcasted_iota(jnp.int32, logits.shape, 0)
    picked = jnp.sum(jnp.where(classes == labels, logits, 0.0),
                     axis=0, keepdims=True)                      # (1, tn)
    per_col = (lse - picked) * inv_n
    if ragged:
        col = (jax.lax.broadcasted_iota(jnp.int32, per_col.shape, 1)
               + pl.program_id(0) * tn)
        per_col = jnp.where(col < n, per_col, 0.0)
    o_ref[0] = per_col


def pallas_cross_entropy(logits_cn, label, mask_row=None):
    """nn.CrossEntropyLoss(mean) on logits (c, n); optional fused column mask."""
    logits = jnp.asarray(logits_cn, jnp.float32)
    c, n = logits.shape
    label2d = jnp.asarray(label, jnp.int32).reshape(1, n)
    maskf = None if mask_row is None else jnp.asarray(mask_row, jnp.float32).reshape(1, n)

    def run(use_buffered):
        tn = n if n <= 2048 else 2048
        num_tiles = -(-n // tn)
        ragged = (n % tn) != 0
        buffers = 3 if use_buffered else None

        in_specs = [_make_spec((c, tn), lambda j: (0, j), buffers),
                    _make_spec((1, tn), lambda j: (0, j), buffers)]
        inputs = [logits, label2d]
        if maskf is not None:
            in_specs.append(_make_spec((1, tn), lambda j: (0, j), buffers))
            inputs.append(maskf)

        kernel = functools.partial(_ce_kernel, has_mask=maskf is not None,
                                   ragged=ragged, n=n, tn=tn, inv_n=1.0 / float(n))
        return pl.pallas_call(
            kernel,
            out_shape=jax.ShapeDtypeStruct((num_tiles, 1, tn), jnp.float32),
            grid=(num_tiles,),
            in_specs=in_specs,
            out_specs=pl.BlockSpec((1, 1, tn), lambda j: (j, 0, 0)),
            compiler_params=pltpu.CompilerParams(
                dimension_semantics=("parallel",),
                vmem_limit_bytes=_VMEM_LIMIT_BYTES),
            cost_estimate=pl.CostEstimate(
                flops=6 * c * n, transcendentals=(c + 1) * n,
                bytes_accessed=4 * (logits.size + n
                                    + (n if maskf is not None else 0)
                                    + num_tiles * tn)),
        )(*inputs)

    try:
        partials = run(_HAS_BUFFERED)
    except Exception:
        if not _HAS_BUFFERED:
            raise
        partials = run(False)
    return jnp.sum(partials)


# ----------------------------------------------------------------------------
# Recon_Loss_Func (JAX/Pallas version)
# ----------------------------------------------------------------------------
class NeuralNMFParams:
    """Minimal stand-in for the Neural NMF `net` (holds depth and A matrices)."""

    def __init__(self, A_lst):
        self.A_lst = list(A_lst)
        self.depth = len(A_lst) + 1


class ReconLossFunc:
    def __init__(self, lambd=0.0, classification_type="CrossEntropy"):
        self.lambd = lambd
        self.classification_type = classification_type

    def __call__(self, net, X, S_lst, pred=None, label=None, L=None):
        # Reconstruction hot path: one fused pallas_call (W@S_L vs X, MSE).
        reconstructionloss = fused_chain_mse(net.A_lst, S_lst[-1], X)

        if pred is None:
            assert label is None and L is None
            return reconstructionloss

        if self.classification_type == "L2":
            # label is the one-hot matrix Y of shape (c, n) in this mode.
            if L is None:
                classificationloss = pallas_fro_norm(pred, label)
            else:
                # L*(pred-label) == L*pred - L*label; the mask is fused in-kernel.
                classificationloss = fused_chain_mse([], pred, label, mask=L)
        else:  # CrossEntropy -- lane-dense (c, n) logits, mask fused in-kernel.
            if L is None:
                classificationloss = pallas_cross_entropy(pred, label)
            else:
                # Same semantics as the PyTorch module: CE((L*pred).T, L[0]*label),
                # mean taken over all n samples (masked samples NOT excluded).
                classificationloss = pallas_cross_entropy(
                    pred, label, mask_row=L[0:1, :])
        return reconstructionloss + self.lambd * classificationloss


# ----------------------------------------------------------------------------
# Pure-JAX references
# ----------------------------------------------------------------------------
def _reference_recon_loss(A_lst, X, S_lst):
    X_approx = S_lst[-1]
    for A in reversed(A_lst):
        X_approx = A @ X_approx
    d = X_approx - X
    return jnp.mean(d * d)


def _reference_ce(logits_nc, label):
    lse = jax.nn.logsumexp(logits_nc, axis=1)
    picked = jnp.take_along_axis(
        logits_nc, label[:, None].astype(jnp.int32), axis=1)[:, 0]
    return jnp.mean(lse - picked)


# ----------------------------------------------------------------------------
# Demo / self-check
# ----------------------------------------------------------------------------
if __name__ == "__main__":
    key = jax.random.PRNGKey(0)
    # Deep NMF dimensions: dims = [32, 16, 8], n = 16 data points, c = 4 classes.
    dims = [32, 16, 8]
    n = 16
    c = 4
    depth = len(dims)

    keys = jax.random.split(key, 10)
    A_lst = [
        jnp.abs(jax.random.normal(keys[i], (dims[i], dims[i + 1]), jnp.float32))
        for i in range(depth - 1)
    ]
    S_lst = [
        jnp.abs(jax.random.normal(keys[3 + i], (dims[i + 1], n), jnp.float32))
        for i in range(depth - 1)
    ]
    X = jnp.abs(jax.random.normal(keys[5], (dims[0], n), jnp.float32))
    pred = jax.random.normal(keys[6], (c, n), jnp.float32)
    label = jax.random.randint(keys[7], (n,), 0, c, jnp.int32)
    onehot_label = jax.nn.one_hot(label, c, dtype=jnp.float32).T          # (c, n)
    mask = (jax.random.uniform(keys[8], (n,)) > 0.5).astype(jnp.float32)
    L = jnp.broadcast_to(mask[None, :], (c, n))                           # (c, n)

    net = NeuralNMFParams(A_lst)

    # Unsupervised reconstruction loss.
    loss_recon = ReconLossFunc(lambd=0.0)(net, X, S_lst)
    # Supervised / semi-supervised CrossEntropy.
    crit_ce = ReconLossFunc(lambd=0.5, classification_type="CrossEntropy")
    loss_ce = crit_ce(net, X, S_lst, pred=pred, label=label)
    loss_ce_semi = crit_ce(net, X, S_lst, pred=pred, label=label, L=L)
    # Supervised / semi-supervised L2 (label = one-hot (c, n)).
    crit_l2 = ReconLossFunc(lambd=0.5, classification_type="L2")
    loss_l2 = crit_l2(net, X, S_lst, pred=pred, label=onehot_label)
    loss_l2_semi = crit_l2(net, X, S_lst, pred=pred, label=onehot_label, L=L)
    jax.block_until_ready((loss_recon, loss_ce, loss_ce_semi, loss_l2, loss_l2_semi))

    # References.
    ref_recon = _reference_recon_loss(A_lst, X, S_lst)
    ref_ce = ref_recon + 0.5 * _reference_ce(pred.T, label)
    l_vec = mask.astype(jnp.int32)
    ref_ce_semi = ref_recon + 0.5 * _reference_ce((L * pred).T, l_vec * label)
    ref_l2 = ref_recon + 0.5 * jnp.mean((pred - onehot_label) ** 2)
    ref_l2_semi = ref_recon + 0.5 * jnp.mean((L * pred - L * onehot_label) ** 2)

    assert jnp.allclose(loss_recon, ref_recon, rtol=1e-4, atol=1e-4), (loss_recon, ref_recon)
    assert jnp.allclose(loss_ce, ref_ce, rtol=1e-4, atol=1e-4), (loss_ce, ref_ce)
    assert jnp.allclose(loss_ce_semi, ref_ce_semi, rtol=1e-4, atol=1e-4), (loss_ce_semi, ref_ce_semi)
    assert jnp.allclose(loss_l2, ref_l2, rtol=1e-4, atol=1e-4), (loss_l2, ref_l2)
    assert jnp.allclose(loss_l2_semi, ref_l2_semi, rtol=1e-4, atol=1e-4), (loss_l2_semi, ref_l2_semi)

    # Larger smoke test: exercises the column-tiled, ragged-masked, pipelined path
    # (n2 = 1300 -> two 768-wide tiles, last one masked in-kernel; no HBM padding).
    dims2 = [256, 64, 32]
    n2 = 1300
    k2 = jax.random.split(keys[9], 6)
    A2 = [jnp.abs(jax.random.normal(k2[i], (dims2[i], dims2[i + 1]), jnp.float32))
          for i in range(len(dims2) - 1)]
    S2 = [jnp.abs(jax.random.normal(k2[2 + i], (dims2[i + 1], n2), jnp.float32))
          for i in range(len(dims2) - 1)]
    X2 = jnp.abs(jax.random.normal(k2[4], (dims2[0], n2), jnp.float32))
    loss_big = ReconLossFunc()(NeuralNMFParams(A2), X2, S2)
    jax.block_until_ready(loss_big)
    ref_big = _reference_recon_loss(A2, X2, S2)
    assert jnp.allclose(loss_big, ref_big, rtol=5e-3), (loss_big, ref_big)

    # TODO(synk): PyTorch reference computes in float64 (.double()); TPU path is float32.
    print("KERNEL_OK")
</pallas_src>

<mosaic_0001>
module attributes {stable_mosaic.version = 11 : i64} {
  func.func @_mse_kernel(%arg0: i32, %arg1: memref<32x8xf32, #tpu.memory_space<vmem>>, %arg2: memref<8x16xf32, #tpu.memory_space<vmem>>, %arg3: memref<32x16xf32, #tpu.memory_space<vmem>>, %arg4: memref<1x1x16xf32, #tpu.memory_space<vmem>>) attributes {dimension_semantics = [#tpu.dimension_semantics<parallel>], iteration_bounds = array<i64: 1>, scalar_prefetch = 0 : i64, scratch_operands = 0 : i64, tpu.core_type = #tpu.core_type<tc>, window_params = [{pipeline_mode = #tpu.pipeline_mode<synchronous>, transform_indices = @transform_0, window_bounds = array<i64: 32, 8>}, {transform_indices = @transform_1, window_bounds = array<i64: 8, 16>}, {transform_indices = @transform_2, window_bounds = array<i64: 32, 16>}, {transform_indices = @transform_3, window_bounds = array<i64: 1, 1, 16>}]} {
    %c0 = arith.constant 0 : index
    %c0_0 = arith.constant 0 : index
    %0 = vector.load %arg2[%c0, %c0_0] : memref<8x16xf32, #tpu.memory_space<vmem>>, vector<8x16xf32>
    %c0_1 = arith.constant 0 : index
    %c0_2 = arith.constant 0 : index
    %1 = vector.load %arg1[%c0_1, %c0_2] : memref<32x8xf32, #tpu.memory_space<vmem>>, vector<32x8xf32>
    %cst = arith.constant dense<0.000000e+00> : vector<32x16xf32>
    %2 = tpu.matmul %1, %0, %cst {dimension_numbers = #tpu.dot_dimension_numbers<[1], [0], [0], [1], [0, 0, 1, 1], [], []>} : vector<32x8xf32>, vector<8x16xf32>, vector<32x16xf32> -> vector<32x16xf32>
    %c0_3 = arith.constant 0 : index
    %c0_4 = arith.constant 0 : index
    %3 = vector.load %arg3[%c0_3, %c0_4] : memref<32x16xf32, #tpu.memory_space<vmem>>, vector<32x16xf32>
    %4 = arith.subf %2, %3 : vector<32x16xf32>
    %5 = arith.mulf %4, %4 : vector<32x16xf32>
    %cst_5 = arith.constant dense<0.000000e+00> : vector<16xf32>
    %6 = vector.multi_reduction <add>, %5, %cst_5 [0] : vector<32x16xf32> to vector<16xf32>
    %7 = vector.shape_cast %6 : vector<16xf32> to vector<1x16xf32>
    %c0_6 = arith.constant 0 : index
    %c0_7 = arith.constant 0 : index
    %c0_8 = arith.constant 0 : index
    %8 = vector.load %arg4[%c0_6, %c0_7, %c0_8] : memref<1x1x16xf32, #tpu.memory_space<vmem>>, vector<1x1x16xf32>
    %9 = vector.shape_cast %8 : vector<1x1x16xf32> to vector<1x16xf32>
    %10 = vector.shape_cast %7 : vector<1x16xf32> to vector<1x1x16xf32>
    tpu.vector_store %arg4[%c0_6, %c0_7, %c0_8], %10 {strides = array<i32>} : memref<1x1x16xf32, #tpu.memory_space<vmem>>, vector<1x1x16xf32>,
    return
  }
  func.func @transform_0(%arg0: i32) -> (i32, i32) {
    %c0_i32 = arith.constant 0 : i32
    %c0_i32_0 = arith.constant 0 : i32
    %c0_i32_1 = arith.constant 0 : i32
    return %c0_i32, %c0_i32_0 : i32, i32
  }
  func.func @transform_1(%arg0: i32) -> (i32, i32) {
    %c0_i32 = arith.constant 0 : i32
    %c0_i32_0 = arith.constant 0 : i32
    return %c0_i32, %arg0 : i32, i32
  }
  func.func @transform_2(%arg0: i32) -> (i32, i32) {
    %c0_i32 = arith.constant 0 : i32
    %c0_i32_0 = arith.constant 0 : i32
    return %c0_i32, %arg0 : i32, i32
  }
  func.func @transform_3(%arg0: i32) -> (i32, i32, i32) {
    %c0_i32 = arith.constant 0 : i32
    %c0_i32_0 = arith.constant 0 : i32
    %c0_i32_1 = arith.constant 0 : i32
    return %arg0, %c0_i32, %c0_i32_0 : i32, i32, i32
  }
}

</mosaic_0001>

<bundles_post_ra>
// kernel: tpu_custom_call.1
= control target key start
LH: loop header
LB: loop body
LE: loop exit
PB: predicated region body
PF: predicated region fallthrough
CT: control target
= control target key end

     0   :  { %vm20_vm0 = vcmask 64512   ;;  %s264_s0 = inlined_call_operand.vmem [shape: f32[32,8], index: 0, kind: input, shape index: {}]   ;;  %s265_s1 = inlined_call_operand.vmem [shape: f32[8,16], index: 1, kind: input, shape index: {}]   ;;  %s266_s2 = inlined_call_operand.vmem [shape: f32[32,16], index: 2, kind: input, shape index: {}]   ;;  %s267_s3 = inlined_call_operand.hbm [shape: f32[1,1,16], index: 3, kind: output, shape index: {}]  }
   0x1   :  { %v15_v0 = vld [vmem:[%s265_s1] sm:$0xff]  ;;  %v17_v2 = vld [vmem:[%s264_s0 + $0x8] sm:$0xff]  ;;  %v18_v3 = vld [vmem:[%s264_s0 + $0x10] sm:$0xff] }
   0x2   :  { %v16_v1 = vld [vmem:[%s264_s0] sm:$0xff]  ;;  %169 = vmatprep.subr.mxu0 %v15_v0  ;;  %177 = vmatprep.subr.mxu1 %v15_v0 }
   0x3   :  { %8 = vsyncpa [#allocation3], 0  ;;  %170 = vmatpush3.msra.mxu0 %v15_v0  ;;  %171 = vmatprep.mubr.msk.f32.mxu0 %vm20_vm0, %v16_v1  ;;  %v19_v4 = vld [vmem:[%s264_s0 + $0x18] sm:$0xff]  ;;  %v119_v5 = vld [vmem:[%s266_s2 + $0x8] sm:$0xff]  ;;  %vm130_vm1 = vcmask 130048   ;;  %vm144_vm2 = vcmask 122880  }
   0x4   :  { %178 = vmatpush3.msra.mxu1 %v15_v0  ;;  %172 = vmatmul.mubr.msk.f32.vlgmr.msra.gmra.mrb[0].mxu0 %vm20_vm0, %v17_v2  ;;  %v118_v6 = vld [vmem:[%s266_s2] sm:$0xff]  ;;  %v121_v8 = vld [vmem:[%s266_s2 + $0x18] sm:$0xff]  ;;  %v120_v11 = vld [vmem:[%s266_s2 + $0x10] sm:$0xff]  ;;  %s204_s2 = smov [#allocation2]  }
   0x5   :  { %174 = vmatprep.mubr.msk.f32.mxu1 %vm20_vm0, %v18_v3  ;;  %s152_s28 = sshll.u32 %s204_s2, 4  ;;  %s153_s28 = int_to_ptr.vmem [resolvable:$true] %s152_s28 }
   0x6   :  { %175 = vmatmul.mubr.msk.f32.vlgmr.msra.gmra.mrb[0].mxu1 %vm20_vm0, %v19_v4  ;;  %s180_s29 = scalar_lea.vmem %s153_s28, 16  ;;  %s184_s30 = scalar_lea.vmem %s153_s28, 32 }
   0x7   :  { %p181_p0 = scmp.ne.s32.totalorder %s153_s28, %s180_s29  ;;  %p185_p1 = scmp.lt.s32.totalorder %s153_s28, %s153_s28 }
   0x8   :  { %p186_p2 = scmp.lt.s32.totalorder %s184_s30, %s180_s29 }
   0xa   :  { %p187_p3 = por %p186_p2, %p185_p1 }
   0xc   :  { %p188_p4 = pnand %p187_p3, %p181_p0 }
  0xd7   :  { %v173_v7 = vpop.f32.mrb[0].mxu0 }
  0xd8   :  { %v123_v9 = vsub.f32 %v173_v7, %v119_v5  ;;  %v99_v10 = vpop.f32.mrb[1].mxu0 }
  0xd9   :  { %v122_v12 = vsub.f32 %v99_v10, %v118_v6  ;;  %v176_v13 = vpop.f32.mrb[0].mxu1 }
  0xda   :  { %v127_v14 = vmul.f32 %v123_v9, %v123_v9  ;;  %v125_v15 = vsub.f32 %v176_v13, %v121_v8  ;;  %v109_v16 = vpop.f32.mrb[1].mxu1 }
  0xdb   :  { %v126_v17 = vmul.f32 %v122_v12, %v122_v12  ;;  %v124_v18 = vsub.f32 %v109_v16, %v120_v11 }
  0xdc   :  { %v132_v19 = vsel %vm130_vm1, %v127_v14, 0.0  ;;  %v129_v21 = vmul.f32 %v125_v15, %v125_v15 }
  0xdd   :  { %v131_v20 = vsel %vm130_vm1, %v126_v17, 0.0  ;;  %v128_v22 = vmul.f32 %v124_v18, %v124_v18 }
  0xde   :  { %v133_v23 = vadd.f32 %v132_v19, %v131_v20  ;;  %v136_v26 = vsel %vm130_vm1, %v129_v21, 0.0 }
  0xdf   :  { %v134_v24 = vsel %vm130_vm1, %v128_v22, 0.0 }
  0xe0   :  { %v135_v25 = vadd.f32 %v134_v24, %v133_v23 }
  0xe2   :  { %v137_v27 = vadd.f32 %v136_v26, %v135_v25 }
  0xe4   :  { %v138_v28 = vrot.slane %v137_v27, 4 }
  0xe6   :  { %v139_v29 = vadd.f32 %v138_v28, %v137_v27 }
  0xe8   :  { %v140_v30 = vrot.slane %v139_v29, 2 }
  0xea   :  { %v141_v31 = vadd.f32 %v140_v30, %v139_v29 }
  0xec   :  { %v142_v32 = vrot.slane %v141_v31, 1 }
  0xee   :  { %v143_v33 = vadd.f32 %v142_v32, %v141_v31 }
  0xf0   :  { %145 = vst.msk [vmem:[#allocation2] sm:$0x1] %vm144_vm2, %v143_v33 }
  0xf1   :  { %191 = shalt.err (!%p188_p4)
}
  0xf2   :  { %s192_s6 = scalar_lea.hbm %s267_s3, 16 }
  0xf3   :  { %p193_p5 = scmp.ne.s32.totalorder %s267_s3, %s192_s6  ;;  %p196_p6 = scmp.lt.u32.totalorder %s192_s6, %s267_s3 }
  0xf5   :  { %p198_p7 = pnand %p196_p6, %p193_p5 }
  0xf7   :  { %201 = shalt.err (!%p198_p7)
}
  0xf8   :  { %155 = dma.vmem_to_hbm [thread:$0]  %s153_s28, 16, %s267_s3, [#allocation3]  }
  0xf9   :  { %202 = dma.done.wait [#allocation3], 16  }
  0xfa   :  { %203 = vsyncadd [#allocation3], 4294967280 }
  0xfb   :  { %159 = vsyncpa [#allocation3], 1 }

</bundles_post_ra>
